<compile_context>
chip_gen: v7x
topology: tpu7x:2x2x1
jax: 0.10.0
libtpu: 0.0.40
codegen_flags: <defaults>
</compile_context>

<pallas_src>
import math

import jax
import jax.numpy as jnp
from jax.experimental import pallas as pl
from jax.experimental.pallas import tpu as pltpu


# ---------------------------------------------------------------------------
# Kernel
# ---------------------------------------------------------------------------
def _time_embedding_kernel(t_ref, emb_ref, w1_ref, b1_ref, w2_ref, b2_ref, o_ref):
    """One grid step = one tile of `bn` timesteps.

    t_ref  : (bn, 1)        int32 timestep indices
    emb_ref: (T, d_model)   fixed sinusoidal table
    w1_ref : (d_model, dim) first Linear weight (in x out, i.e. torch W1.T)
    b1_ref : (1, dim)
    w2_ref : (dim, dim)     second Linear weight (in x out, i.e. torch W2.T)
    b2_ref : (1, dim)
    o_ref  : (bn, dim)
    """
    bn = o_ref.shape[0]
    n_table = emb_ref.shape[0]

    # Embedding gather as a one-hot matmul on the MXU (no XLU / irregular access).
    t = t_ref[...]                                                   # (bn, 1) int32
    lane = jax.lax.broadcasted_iota(jnp.int32, (bn, n_table), 1)     # (bn, T)
    onehot = (lane == t).astype(jnp.float32)
    x = jnp.dot(onehot, emb_ref[...],
                preferred_element_type=jnp.float32)                  # (bn, d_model)

    # Linear -> Swish -> Linear, fully resident in VMEM/vregs.
    h = jnp.dot(x, w1_ref[...], preferred_element_type=jnp.float32) + b1_ref[...]
    h = h * jax.nn.sigmoid(h)                                        # Swish (EUP)
    y = jnp.dot(h, w2_ref[...], preferred_element_type=jnp.float32) + b2_ref[...]
    o_ref[...] = y.astype(o_ref.dtype)


# ---------------------------------------------------------------------------
# Wrapper
# ---------------------------------------------------------------------------
def make_sinusoidal_table(T, d_model):
    """Exactly the table built in TimeEmbedding.__init__ (sin/cos interleaved)."""
    assert d_model % 2 == 0
    freqs = jnp.exp(-(jnp.arange(0, d_model, 2, dtype=jnp.float32) / d_model)
                    * math.log(10000.0))
    pos = jnp.arange(T, dtype=jnp.float32)
    ang = pos[:, None] * freqs[None, :]                              # (T, d_model//2)
    emb = jnp.stack([jnp.sin(ang), jnp.cos(ang)], axis=-1)           # (T, d_model//2, 2)
    return emb.reshape(T, d_model)


def _round_up(v, m):
    return (v + m - 1) // m * m


def time_embedding_forward(t, params, *, block_n=128):
    """Pallas TimeEmbedding.forward: t int32 [N] -> [N, dim] float32."""
    emb_table = params["emb"]                 # (T, d_model)
    w1 = params["w1"]                         # (d_model, dim) == torch W1.T
    b1 = params["b1"].reshape(1, -1)
    w2 = params["w2"]                         # (dim, dim)     == torch W2.T
    b2 = params["b2"].reshape(1, -1)

    n = t.shape[0]
    T, d_model = emb_table.shape
    dim = w1.shape[1]

    # Batch tiling: lane-dense (bn, dim) output blocks; pad N up to the tile size.
    bn = max(8, min(block_n, _round_up(n, 8)))
    n_pad = _round_up(n, bn)
    t2 = t.astype(jnp.int32).reshape(n, 1)
    if n_pad != n:
        t2 = jnp.pad(t2, ((0, n_pad - n), (0, 0)))   # padded rows compute index 0, sliced off below

    out = pl.pallas_call(
        _time_embedding_kernel,
        out_shape=jax.ShapeDtypeStruct((n_pad, dim), jnp.float32),
        grid=(n_pad // bn,),
        in_specs=[
            pl.BlockSpec((bn, 1), lambda i: (i, 0)),          # timestep indices
            pl.BlockSpec((T, d_model), lambda i: (0, 0)),     # sinusoidal table (VMEM-resident)
            pl.BlockSpec((d_model, dim), lambda i: (0, 0)),   # linear-1 weight
            pl.BlockSpec((1, dim), lambda i: (0, 0)),         # linear-1 bias
            pl.BlockSpec((dim, dim), lambda i: (0, 0)),       # linear-2 weight
            pl.BlockSpec((1, dim), lambda i: (0, 0)),         # linear-2 bias
        ],
        out_specs=pl.BlockSpec((bn, dim), lambda i: (i, 0)),
        compiler_params=pltpu.CompilerParams(
            dimension_semantics=("parallel",)),
    )(t2, emb_table, w1, b1, w2, b2)
    return out[:n]


# ---------------------------------------------------------------------------
# Pure-JAX reference (for correctness check)
# ---------------------------------------------------------------------------
def reference_forward(t, params):
    x = params["emb"][t]                                  # embedding lookup
    h = x @ params["w1"] + params["b1"]                   # Linear(d_model, dim)
    h = h * jax.nn.sigmoid(h)                             # Swish
    return h @ params["w2"] + params["b2"]                # Linear(dim, dim)


# ---------------------------------------------------------------------------
# Main
# ---------------------------------------------------------------------------
if __name__ == "__main__":
    key = jax.random.PRNGKey(0)
    T, d_model, dim = 16, 64, 128     # small but lane-dense output (dim = 128)
    N = 8                             # batch of timesteps

    ks = jax.random.split(key, 5)
    t = jax.random.randint(ks[0], (N,), 0, T, dtype=jnp.int32)

    def xavier(k, shape):
        fan_in, fan_out = shape
        bound = math.sqrt(6.0 / (fan_in + fan_out))
        return jax.random.uniform(k, shape, jnp.float32, -bound, bound)

    # NOTE: module.initialize() zeroes the biases; small random biases are used here so
    # the bias-add path of the kernel is actually exercised (forward semantics identical).
    params = {
        "emb": make_sinusoidal_table(T, d_model),
        "w1": xavier(ks[1], (d_model, dim)),
        "b1": 0.05 * jax.random.normal(ks[2], (dim,), jnp.float32),
        "w2": xavier(ks[3], (dim, dim)),
        "b2": 0.05 * jax.random.normal(ks[4], (dim,), jnp.float32),
    }

    out = time_embedding_forward(t, params)
    out = jax.block_until_ready(out)

    ref = reference_forward(t, params)
    assert out.shape == (N, dim)
    max_err = float(jnp.max(jnp.abs(out - ref)))
    assert jnp.allclose(out, ref, atol=1e-4, rtol=1e-4), max_err

    print("KERNEL_OK")
</pallas_src>

<mosaic_0001>
module attributes {stable_mosaic.version = 11 : i64} {
  func.func @_time_embedding_kernel(%arg0: i32, %arg1: memref<8x1xi32, #tpu.memory_space<vmem>>, %arg2: memref<16x64xf32, #tpu.memory_space<vmem>>, %arg3: memref<64x128xf32, #tpu.memory_space<vmem>>, %arg4: memref<1x128xf32, #tpu.memory_space<vmem>>, %arg5: memref<128x128xf32, #tpu.memory_space<vmem>>, %arg6: memref<1x128xf32, #tpu.memory_space<vmem>>, %arg7: memref<8x128xf32, #tpu.memory_space<vmem>>) attributes {dimension_semantics = [#tpu.dimension_semantics<parallel>], iteration_bounds = array<i64: 1>, scalar_prefetch = 0 : i64, scratch_operands = 0 : i64, tpu.core_type = #tpu.core_type<tc>, window_params = [{transform_indices = @transform_0, window_bounds = array<i64: 8, 1>}, {pipeline_mode = #tpu.pipeline_mode<synchronous>, transform_indices = @transform_1, window_bounds = array<i64: 16, 64>}, {pipeline_mode = #tpu.pipeline_mode<synchronous>, transform_indices = @transform_2, window_bounds = array<i64: 64, 128>}, {pipeline_mode = #tpu.pipeline_mode<synchronous>, transform_indices = @transform_3, window_bounds = array<i64: 1, 128>}, {pipeline_mode = #tpu.pipeline_mode<synchronous>, transform_indices = @transform_4, window_bounds = array<i64: 128, 128>}, {pipeline_mode = #tpu.pipeline_mode<synchronous>, transform_indices = @transform_5, window_bounds = array<i64: 1, 128>}, {transform_indices = @transform_6, window_bounds = array<i64: 8, 128>}]} {
    %c0 = arith.constant 0 : index
    %c0_0 = arith.constant 0 : index
    %0 = vector.load %arg1[%c0, %c0_0] : memref<8x1xi32, #tpu.memory_space<vmem>>, vector<8x1xi32>
    %1 = tpu.iota {dimensions = array<i32: 1>} : vector<8x16xi32>
    %2 = vector.broadcast %0 : vector<8x1xi32> to vector<8x16xi32>
    %3 = arith.cmpi eq, %1, %2 : vector<8x16xi32>
    %4 = arith.extui %3 : vector<8x16xi1> to vector<8x16xi32>
    %5 = arith.sitofp %4 : vector<8x16xi32> to vector<8x16xf32>
    %c0_1 = arith.constant 0 : index
    %c0_2 = arith.constant 0 : index
    %6 = vector.load %arg2[%c0_1, %c0_2] : memref<16x64xf32, #tpu.memory_space<vmem>>, vector<16x64xf32>
    %cst = arith.constant dense<0.000000e+00> : vector<8x64xf32>
    %7 = tpu.matmul %5, %6, %cst {dimension_numbers = #tpu.dot_dimension_numbers<[1], [0], [0], [1], [0, 0, 1, 1], [], []>} : vector<8x16xf32>, vector<16x64xf32>, vector<8x64xf32> -> vector<8x64xf32>
    %c0_3 = arith.constant 0 : index
    %c0_4 = arith.constant 0 : index
    %8 = vector.load %arg3[%c0_3, %c0_4] : memref<64x128xf32, #tpu.memory_space<vmem>>, vector<64x128xf32>
    %cst_5 = arith.constant dense<0.000000e+00> : vector<8x128xf32>
    %9 = tpu.matmul %7, %8, %cst_5 {dimension_numbers = #tpu.dot_dimension_numbers<[1], [0], [0], [1], [0, 0, 1, 1], [], []>} : vector<8x64xf32>, vector<64x128xf32>, vector<8x128xf32> -> vector<8x128xf32>
    %c0_6 = arith.constant 0 : index
    %c0_7 = arith.constant 0 : index
    %10 = vector.load %arg4[%c0_6, %c0_7] : memref<1x128xf32, #tpu.memory_space<vmem>>, vector<1x128xf32>
    %11 = vector.broadcast %10 : vector<1x128xf32> to vector<8x128xf32>
    %12 = arith.addf %9, %11 : vector<8x128xf32>
    %13 = arith.negf %12 : vector<8x128xf32>
    %14 = math.exp %13 : vector<8x128xf32>
    %cst_8 = arith.constant 1.000000e+00 : f32
    %15 = vector.broadcast %cst_8 : f32 to vector<8x128xf32>
    %16 = arith.addf %15, %14 : vector<8x128xf32>
    %17 = arith.divf %15, %16 : vector<8x128xf32>
    %18 = arith.mulf %12, %17 : vector<8x128xf32>
    %c0_9 = arith.constant 0 : index
    %c0_10 = arith.constant 0 : index
    %19 = vector.load %arg5[%c0_9, %c0_10] : memref<128x128xf32, #tpu.memory_space<vmem>>, vector<128x128xf32>
    %cst_11 = arith.constant dense<0.000000e+00> : vector<8x128xf32>
    %20 = tpu.matmul %18, %19, %cst_11 {dimension_numbers = #tpu.dot_dimension_numbers<[1], [0], [0], [1], [0, 0, 1, 1], [], []>} : vector<8x128xf32>, vector<128x128xf32>, vector<8x128xf32> -> vector<8x128xf32>
    %c0_12 = arith.constant 0 : index
    %c0_13 = arith.constant 0 : index
    %21 = vector.load %arg6[%c0_12, %c0_13] : memref<1x128xf32, #tpu.memory_space<vmem>>, vector<1x128xf32>
    %22 = vector.broadcast %21 : vector<1x128xf32> to vector<8x128xf32>
    %23 = arith.addf %20, %22 : vector<8x128xf32>
    %c0_14 = arith.constant 0 : index
    %c0_15 = arith.constant 0 : index
    %24 = vector.load %arg7[%c0_14, %c0_15] : memref<8x128xf32, #tpu.memory_space<vmem>>, vector<8x128xf32>
    tpu.vector_store %arg7[%c0_14, %c0_15], %23 {strides = array<i32>} : memref<8x128xf32, #tpu.memory_space<vmem>>, vector<8x128xf32>,
    return
  }
  func.func @transform_0(%arg0: i32) -> (i32, i32) {
    %c0_i32 = arith.constant 0 : i32
    %c0_i32_0 = arith.constant 0 : i32
    return %arg0, %c0_i32 : i32, i32
  }
  func.func @transform_1(%arg0: i32) -> (i32, i32) {
    %c0_i32 = arith.constant 0 : i32
    %c0_i32_0 = arith.constant 0 : i32
    %c0_i32_1 = arith.constant 0 : i32
    return %c0_i32, %c0_i32_0 : i32, i32
  }
  func.func @transform_2(%arg0: i32) -> (i32, i32) {
    %c0_i32 = arith.constant 0 : i32
    %c0_i32_0 = arith.constant 0 : i32
    %c0_i32_1 = arith.constant 0 : i32
    return %c0_i32, %c0_i32_0 : i32, i32
  }
  func.func @transform_3(%arg0: i32) -> (i32, i32) {
    %c0_i32 = arith.constant 0 : i32
    %c0_i32_0 = arith.constant 0 : i32
    %c0_i32_1 = arith.constant 0 : i32
    return %c0_i32, %c0_i32_0 : i32, i32
  }
  func.func @transform_4(%arg0: i32) -> (i32, i32) {
    %c0_i32 = arith.constant 0 : i32
    %c0_i32_0 = arith.constant 0 : i32
    %c0_i32_1 = arith.constant 0 : i32
    return %c0_i32, %c0_i32_0 : i32, i32
  }
  func.func @transform_5(%arg0: i32) -> (i32, i32) {
    %c0_i32 = arith.constant 0 : i32
    %c0_i32_0 = arith.constant 0 : i32
    %c0_i32_1 = arith.constant 0 : i32
    return %c0_i32, %c0_i32_0 : i32, i32
  }
  func.func @transform_6(%arg0: i32) -> (i32, i32) {
    %c0_i32 = arith.constant 0 : i32
    %c0_i32_0 = arith.constant 0 : i32
    return %arg0, %c0_i32 : i32, i32
  }
}

</mosaic_0001>

<bundles_post_ra>
// kernel: tpu_custom_call.1
= control target key start
LH: loop header
LB: loop body
LE: loop exit
PB: predicated region body
PF: predicated region fallthrough
CT: control target
= control target key end

     0   :  { %11 = vsyncpa [#allocation3], 0  ;;  %s734_s0 = inlined_call_operand.vmem [shape: s32[8,1], index: 0, kind: input, shape index: {}]   ;;  %s735_s1 = inlined_call_operand.hbm [shape: f32[16,64], index: 1, kind: input, shape index: {}]   ;;  %s736_s2 = inlined_call_operand.hbm [shape: f32[64,128], index: 2, kind: input, shape index: {}]   ;;  %s737_s3 = inlined_call_operand.vmem [shape: f32[1,128], index: 3, kind: input, shape index: {}]   ;;  %s738_s4 = inlined_call_operand.hbm [shape: f32[128,128], index: 4, kind: input, shape index: {}]   ;;  %s739_s5 = inlined_call_operand.vmem [shape: f32[1,128], index: 5, kind: input, shape index: {}]   ;;  %s740_s6 = inlined_call_operand.hbm [shape: f32[8,128], index: 6, kind: output, shape index: {}]  }
   0x1   :  { %12 = vsyncpa [#allocation6], 0 }
   0x2   :  { %13 = vsyncpa [#allocation4], 0  ;;  %s600_s21 = smov [#allocation5]   ;;  %s601_s23 = smov [#allocation2]  }
   0x3   :  { %s33_s22 = sshll.u32 %s600_s21, 4  ;;  %s21_s24 = sshll.u32 %s601_s23, 4  ;;  %s34_s22 = int_to_ptr.vmem [resolvable:$true] %s33_s22  ;;  %s645_s24 = int_to_ptr.vmem [resolvable:$true] %s21_s24 }
   0x4   :  { %s506_s27 = scalar_lea.hbm %s736_s2, 1024 }
   0x5   :  { %p507_p0 = scmp.ne.s32.totalorder %s736_s2, %s506_s27  ;;  %p510_p1 = scmp.lt.u32.totalorder %s506_s27, %s736_s2 }
   0x7   :  { %p512_p2 = pnand %p510_p1, %p507_p0 }
   0x9   :  { %515 = shalt.err (!%p512_p2)
}
   0xa   :  { %s516_s8 = scalar_lea.vmem %s34_s22, 1024  ;;  %p521_p4 = scmp.lt.s32.totalorder %s34_s22, %s34_s22 }
   0xb   :  { %p517_p3 = scmp.ne.s32.totalorder %s34_s22, %s516_s8  ;;  %p522_p5 = scmp.lt.s32.totalorder %s516_s8, %s516_s8 }
   0xd   :  { %p523_p6 = por %p522_p5, %p521_p4 }
   0xf   :  { %p524_p7 = pnand %p523_p6, %p517_p3 }
  0x11   :  { %527 = shalt.err (!%p524_p7)
}
  0x12   :  { %s602_s9 = smov 128   ;;  %s603_s10 = smov 8  }
  0x13   :  { %39 = dma.hbm_to_vmem [thread:$0]  %s736_s2, 1024, %s34_s22, [#allocation6], %s602_s9, %s602_s9, %s603_s10  }
  0x14   :  { %s528_s15 = scalar_lea.hbm %s735_s1, 256 }
  0x15   :  { %p529_p8 = scmp.ne.s32.totalorder %s735_s1, %s528_s15  ;;  %p532_p9 = scmp.lt.u32.totalorder %s528_s15, %s735_s1 }
  0x17   :  { %p534_p10 = pnand %p532_p9, %p529_p8 }
  0x19   :  { %537 = shalt.err (!%p534_p10)
}
  0x1a   :  { %s538_s20 = scalar_lea.vmem %s645_s24, 256  ;;  %p543_p12 = scmp.lt.s32.totalorder %s645_s24, %s645_s24 }
  0x1b   :  { %p539_p11 = scmp.ne.s32.totalorder %s645_s24, %s538_s20  ;;  %p544_p13 = scmp.lt.s32.totalorder %s538_s20, %s538_s20 }
  0x1d   :  { %p545_p0 = por %p544_p13, %p543_p12 }
  0x1f   :  { %p546_p1 = pnand %p545_p0, %p539_p11 }
  0x21   :  { %549 = shalt.err (!%p546_p1)
}
  0x22   :  { %27 = dma.hbm_to_vmem [thread:$0]  %s735_s1, 256, %s645_s24, [#allocation3], %s602_s9, %s602_s9, %s603_s10  }
  0x23   :  { %s604_s22 = smov [#allocation7]   ;;  %s550_s27 = scalar_lea.hbm %s738_s4, 2048 }
  0x24   :  { %s47_s23 = sshll.u32 %s604_s22, 4  ;;  %p551_p2 = scmp.ne.s32.totalorder %s738_s4, %s550_s27  ;;  %s48_s23 = int_to_ptr.vmem [resolvable:$true] %s47_s23 }
  0x25   :  { %p554_p3 = scmp.lt.u32.totalorder %s550_s27, %s738_s4 }
  0x27   :  { %p556_p4 = pnand %p554_p3, %p551_p2 }
  0x29   :  { %559 = shalt.err (!%p556_p4)
}
  0x2a   :  { %s560_s8 = scalar_lea.vmem %s48_s23, 2048  ;;  %p565_p6 = scmp.lt.s32.totalorder %s48_s23, %s48_s23 }
  0x2b   :  { %p561_p5 = scmp.ne.s32.totalorder %s48_s23, %s560_s8  ;;  %p566_p7 = scmp.lt.s32.totalorder %s560_s8, %s560_s8 }
  0x2d   :  { %p567_p8 = por %p566_p7, %p565_p6 }
  0x2f   :  { %p568_p9 = pnand %p567_p8, %p561_p5 }
  0x31   :  { %571 = shalt.err (!%p568_p9)
}
  0x32   :  { %53 = dma.hbm_to_vmem [thread:$0]  %s738_s4, 2048, %s48_s23, [#allocation6], %s602_s9, %s602_s9, %s603_s10  }
  0x33   :  { %594 = dma.done.wait [#allocation3], 256  }
  0x34   :  { %595 = vsyncadd [#allocation3], 4294967040 }
  0x35   :  { %596 = dma.done.wait [#allocation6], 3072  }
  0x36   :  { %597 = vsyncadd [#allocation6], 4294964224  ;;  %v605_v0 = vmov 0   ;;  %v606_v1 = vmov 0.0|0.0   ;;  %v65_v2 = vld [vmem:[%s734_s0] sm:$0xff]  ;;  %v75_v4 = vld [vmem:[#allocation2 + $0x8] sm:$0xff]  ;;  %v66_v7 = vlaneseq }
  0x37   :  { %501 = vset.pattern.permute.xlu0 %v605_v0  ;;  %452 = vmatprep.subr.bf16.mxu1 %v606_v1  ;;  %v74_v3 = vld [vmem:[#allocation2] sm:$0xff]  ;;  %vm607_vm0 = vmmov 0   ;;  %v608_v6 = vmov 0.0   ;;  %v150_v9 = vld [vmem:[#allocation5] sm:$0xff]  ;;  %v151_v10 = vld [vmem:[#allocation5 + $0x8] sm:$0xff]  ;;  %vm76_vm1 = vcmask 130048  }
  0x38   :  { %467 = vmatprep.subr.bf16.mxu0 %v606_v1  ;;  %69 = vperm.xlu0 %501, %v65_v2   ;;  %v453_v5 = vpack.c.bf16 %v75_v4, %v74_v3  ;;  %v67_v8 = vand.u32 127, %v66_v7  ;;  %v456_v12 = vpack.c.bf16 %v151_v10, %v150_v9  ;;  %v152_v13 = vld [vmem:[#allocation5 + $0x10] sm:$0xff]  ;;  %v153_v14 = vld [vmem:[#allocation5 + $0x18] sm:$0xff]  ;;  %v154_v17 = vld [vmem:[#allocation5 + $0x20] sm:$0xff]  ;;  %vm165_vm3 = vcmask 523264   ;;  %s609_s13 = smov [#allocation8]  }
  0x39   :  { %395 = vmatprep.mubr.msk.f32.mxu1 %vm607_vm0, %v608_v6  ;;  %449 = vmatprep.mubr.msk.f32.mxu0 %vm607_vm0, %v608_v6  ;;  %v459_v16 = vpack.c.bf16 %v153_v14, %v152_v13  ;;  %v155_v18 = vld [vmem:[#allocation5 + $0x28] sm:$0xff]  ;;  %v156_v20 = vld [vmem:[#allocation5 + $0x30] sm:$0xff]  ;;  %v157_v21 = vld [vmem:[#allocation5 + $0x38] sm:$0xff]  ;;  %s346_s14 = sshll.u32 %s609_s13, 4  ;;  %s347_s14 = int_to_ptr.vmem [resolvable:$true] %s346_s14 }
  0x3a   :  { %454 = vmatpush3.bf16.msra.mxu1 %v453_v5  ;;  %v462_v19 = vpack.c.bf16 %v155_v18, %v154_v17  ;;  %v465_v22 = vpack.c.bf16 %v157_v21, %v156_v20  ;;  %v246_v25 = vld [vmem:[#allocation7] sm:$0xff]  ;;  %v247_v26 = vld [vmem:[#allocation7 + $0x8] sm:$0xff]  ;;  %v248_v28 = vld [vmem:[#allocation7 + $0x10] sm:$0xff]  ;;  %p577_p11 = scmp.lt.s32.totalorder %s347_s14, %s347_s14 }
  0x3b   :  { %455 = vmatprep.subr.bf16.mxu1 %v606_v1  ;;  %v468_v27 = vpack.c.bf16 %v247_v26, %v246_v25  ;;  %v249_v29 = vld [vmem:[#allocation7 + $0x18] sm:$0xff]  ;;  %v250_v31 = vld [vmem:[#allocation7 + $0x20] sm:$0xff]  ;;  %v251_v32 = vld [vmem:[#allocation7 + $0x28] sm:$0xff] }
  0x3c   :  { %v471_v30 = vpack.c.bf16 %v249_v29, %v248_v28  ;;  %v474_v33 = vpack.c.bf16 %v251_v32, %v250_v31  ;;  %v252_v34 = vld [vmem:[#allocation7 + $0x30] sm:$0xff]  ;;  %v253_v35 = vld [vmem:[#allocation7 + $0x38] sm:$0xff]  ;;  %v254_v37 = vld [vmem:[#allocation7 + $0x40] sm:$0xff] }
  0x3d   :  { %469 = vmatpush3.bf16.msra.mxu0 %v468_v27  ;;  %v477_v36 = vpack.c.bf16 %v253_v35, %v252_v34  ;;  %v255_v38 = vld [vmem:[#allocation7 + $0x48] sm:$0xff]  ;;  %v256_v40 = vld [vmem:[#allocation7 + $0x50] sm:$0xff]  ;;  %v257_v41 = vld [vmem:[#allocation7 + $0x58] sm:$0xff] }
  0x3e   :  { %470 = vmatprep.subr.bf16.mxu0 %v606_v1  ;;  %v480_v39 = vpack.c.bf16 %v255_v38, %v254_v37  ;;  %v483_v42 = vpack.c.bf16 %v257_v41, %v256_v40  ;;  %v258_v43 = vld [vmem:[#allocation7 + $0x60] sm:$0xff]  ;;  %v259_v44 = vld [vmem:[#allocation7 + $0x68] sm:$0xff]  ;;  %v260_v46 = vld [vmem:[#allocation7 + $0x70] sm:$0xff] }
  0x3f   :  { %v486_v45 = vpack.c.bf16 %v259_v44, %v258_v43  ;;  %v261_v47 = vld [vmem:[#allocation7 + $0x78] sm:$0xff]  ;;  %v358_v49 = vld [vmem:[%s737_s3] ss:$0 sm:$0xff]  ;;  %s572_s3 = scalar_lea.vmem %s347_s14, 128 }
  0x40   :  { %v489_v48 = vpack.c.bf16 %v261_v47, %v260_v46  ;;  %v361_v58 = vld [vmem:[%s739_s5] ss:$0 sm:$0xff]  ;;  %p573_p10 = scmp.ne.s32.totalorder %s347_s14, %s572_s3  ;;  %p578_p12 = scmp.lt.s32.totalorder %s572_s3, %s572_s3 }
  0x41   :  { %472 = vmatpush3.bf16.msra.mxu0 %v471_v30 }
  0x42   :  { %473 = vmatprep.subr.bf16.mxu0 %v606_v1  ;;  %p579_p13 = por %p578_p12, %p577_p11 }
  0x44   :  { %p580_p0 = pnand %p579_p13, %p573_p10 }
  0x45   :  { %475 = vmatpush3.bf16.msra.mxu0 %v474_v33 }
  0x46   :  { %476 = vmatprep.subr.bf16.mxu0 %v606_v1 }
  0x49   :  { %478 = vmatpush3.bf16.msra.mxu0 %v477_v36 }
  0x4a   :  { %479 = vmatprep.subr.bf16.mxu0 %v606_v1 }
  0x4d   :  { %481 = vmatpush3.bf16.msra.mxu0 %v480_v39 }
  0x4e   :  { %482 = vmatprep.subr.bf16.mxu0 %v606_v1 }
  0x51   :  { %484 = vmatpush3.bf16.msra.mxu0 %v483_v42 }
  0x52   :  { %485 = vmatprep.subr.bf16.mxu0 %v606_v1 }
  0x55   :  { %487 = vmatpush3.bf16.msra.mxu0 %v486_v45 }
  0x56   :  { %488 = vmatprep.subr.bf16.mxu0 %v606_v1 }
  0x59   :  { %490 = vmatpush3.bf16.msra.mxu0 %v489_v48 }
  0xb7   :  { %v70_v11 = vpop.permute.xlu0 %69 }
  0xb8   :  { %vm71_vm2 = vcmp.eq.s32.totalorder %v67_v8, %v70_v11 }
  0xb9   :  { %v356_v15 = vsel %vm71_vm2, 1.0, %v608_v6 }
  0xba   :  { %396 = vmatmul.mubr.msk.f32.vlgmr.msra.gmra.mrb[0].mxu1 %vm76_vm1, %v356_v15 }
  0xbb   :  { %457 = vmatpush3.bf16.msra.mxu1 %v456_v12  ;;  %414 = vmatprep.mubr.msk.f32.mxu1 %vm607_vm0, %v608_v6 }
  0xbc   :  { %458 = vmatprep.subr.bf16.mxu1 %v606_v1 }
  0xbf   :  { %460 = vmatpush3.bf16.msra.mxu1 %v459_v16 }
  0xc0   :  { %461 = vmatprep.subr.bf16.mxu1 %v606_v1 }
  0xc3   :  { %463 = vmatpush3.bf16.msra.mxu1 %v462_v19 }
  0xc4   :  { %464 = vmatprep.subr.bf16.mxu1 %v606_v1 }
  0xc7   :  { %466 = vmatpush3.bf16.msra.mxu1 %v465_v22 }
 0x18d   :  { %v146_v23 = vpop.f32.mrb[0].mxu1 }
 0x18e   :  { %v397_v24 = vpop.f32.mrb[1].mxu1  ;;  %415 = vmatmul.mubr.msk.f32.vlgmr.msra.gmra.mrb[2].mxu1 %vm165_vm3, %v146_v23 }
 0x261   :  { %v235_v50 = vpop.f32.mrb[2].mxu1 }
 0x262   :  { %v236_v51 = vadd.f32 %v358_v49, %v235_v50  ;;  %v416_v52 = vpop.f32.mrb[3].mxu1 }
 0x264   :  { %v360_v53 = vmul.f32 -1.442695, %v236_v51 }
 0x266   :  { %502 = vpow2.f32 %v360_v53 }
 0x270   :  { %v503_v54 = vpop.eup %502 }
 0x271   :  { %v242_v55 = vadd.f32 1.0, %v503_v54 }
 0x273   :  { %504 = vrcp.f32 %v242_v55 }
 0x27d   :  { %v505_v56 = vpop.eup %504 }
 0x27e   :  { %v245_v57 = vmul.f32 %v505_v56, %v236_v51 }
 0x280   :  { %450 = vmatmul.mubr.f32.vlgmr.msra.gmra.mrb[0].mxu0 %v245_v57 }
 0x353   :  { %v335_v59 = vpop.f32.mrb[0].mxu0 }
 0x354   :  { %v336_v60 = vadd.f32 %v361_v58, %v335_v59  ;;  %v451_v61 = vpop.f32.mrb[1].mxu0 }
 0x356   :  { %339 = vst [vmem:[#allocation8] sm:$0xff] %v336_v60 }
 0x357   :  { %583 = shalt.err (!%p580_p0)
}
 0x358   :  { %s584_s17 = scalar_lea.hbm %s740_s6, 128 }
 0x359   :  { %p585_p1 = scmp.ne.s32.totalorder %s740_s6, %s584_s17  ;;  %p588_p2 = scmp.lt.u32.totalorder %s584_s17, %s740_s6 }
 0x35b   :  { %p590_p3 = pnand %p588_p2, %p585_p1 }
 0x35d   :  { %593 = shalt.err (!%p590_p3)
}
 0x35e   :  { %349 = dma.vmem_to_hbm [thread:$0]  %s347_s14, 128, %s740_s6, [#allocation4]  }
 0x35f   :  { %598 = dma.done.wait [#allocation4], 128  }
 0x360   :  { %599 = vsyncadd [#allocation4], 4294967168 }
 0x361   :  { %353 = vsyncpa [#allocation3], 1 }
 0x362   :  { %354 = vsyncpa [#allocation6], 1 }
 0x363   :  { %355 = vsyncpa [#allocation4], 1 }

</bundles_post_ra>
